<compile_context>
chip_gen: v7x
topology: tpu7x:2x2x1
jax: 0.10.0
libtpu: 0.0.40
codegen_flags: <defaults>
</compile_context>

<pallas_src>
import functools

import jax
import jax.numpy as jnp
import numpy as np
from jax.experimental import pallas as pl
from jax.experimental.pallas import tpu as pltpu

BN_EPS = 1e-5
LANE = 128     # lane width; hidden layers (64) are zero-padded up to this
H_PAD = 128    # padded hidden width (fc1_units, fc2_units <= 128 assumed)


def actor_kernel(x_ref, w_ref, p_ref, out_ref, *, in_pad):
    """Whole forward pass in one invocation (everything fits in VMEM).

    x_ref   : (B, in_pad)            state, feature dim zero-padded to mult of 8
    w_ref   : (in_pad + 2*128, 128)  [w1_pad ; w2_pad ; w3_pad] stacked on rows
    w_ref rows/cols beyond the true fan-in/fan-out are zero, so padded lanes
    carry exact zeros through matmul -> ReLU -> BN -> matmul.
    p_ref   : (8, 128)               rows: b1,g1,be1,b2,g2,be2,b3,(unused)
    out_ref : (B, 128)               lane-dense output; caller slices [:, :out]
    """
    x = x_ref[...]

    # Static ref slices of the packed slabs (tile-aligned, zero runtime cost).
    w1 = w_ref[0:in_pad, :]
    w2 = w_ref[in_pad:in_pad + H_PAD, :]
    w3 = w_ref[in_pad + H_PAD:in_pad + 2 * H_PAD, :]

    b1 = p_ref[0:1, :]
    g1 = p_ref[1:2, :]
    be1 = p_ref[2:3, :]
    b2 = p_ref[3:4, :]
    g2 = p_ref[4:5, :]
    be2 = p_ref[5:6, :]
    b3 = p_ref[6:7, :]

    # ---- fc1 + ReLU -------------------------------------------------------
    h = jnp.dot(x, w1, preferred_element_type=jnp.float32) + b1
    h = jnp.maximum(h, 0.0)

    # ---- BatchNorm1d (batch stats, biased variance, single-pass) ----------
    m = jnp.mean(h, axis=0, keepdims=True)
    v = jnp.maximum(jnp.mean(h * h, axis=0, keepdims=True) - m * m, 0.0)
    h = (h - m) * jax.lax.rsqrt(v + BN_EPS) * g1 + be1

    # ---- fc2 + ReLU -------------------------------------------------------
    h = jnp.dot(h, w2, preferred_element_type=jnp.float32) + b2
    h = jnp.maximum(h, 0.0)

    # ---- BatchNorm1d ------------------------------------------------------
    m = jnp.mean(h, axis=0, keepdims=True)
    v = jnp.maximum(jnp.mean(h * h, axis=0, keepdims=True) - m * m, 0.0)
    h = (h - m) * jax.lax.rsqrt(v + BN_EPS) * g2 + be2

    # ---- fc3 + tanh (padded lanes are exactly 0 -> tanh(0) = 0) ----------
    y = jnp.dot(h, w3, preferred_element_type=jnp.float32) + b3
    out_ref[...] = jnp.tanh(y)


@functools.partial(jax.jit, static_argnames=("in_pad", "out_size"))
def actor_forward(state, w_slab, p_slab, *, in_pad, out_size):
    B, in_size = state.shape
    if in_size < in_pad:
        state = jnp.pad(state, ((0, 0), (0, in_pad - in_size)))
    out = pl.pallas_call(
        functools.partial(actor_kernel, in_pad=in_pad),
        out_shape=jax.ShapeDtypeStruct((B, LANE), jnp.float32),
        # Tiny arrays: whole-array blocks resident in VMEM (3 inputs, 1 output).
        in_specs=[pl.BlockSpec(memory_space=pltpu.MemorySpace.VMEM)] * 3,
        out_specs=pl.BlockSpec(memory_space=pltpu.MemorySpace.VMEM),
    )(state, w_slab, p_slab)
    return out[:, :out_size]


def pack_actor_params(p):
    """Pack the 10 small parameter arrays into two lane-padded VMEM slabs."""
    in_size = p["w1"].shape[0]
    out_size = p["w3"].shape[1]
    in_pad = ((in_size + 7) // 8) * 8  # sublane-aligned row count for w1

    def pad2(a, rows, cols):
        return jnp.pad(a, ((0, rows - a.shape[0]), (0, cols - a.shape[1])))

    w_slab = jnp.concatenate(
        [pad2(p["w1"], in_pad, LANE),
         pad2(p["w2"], H_PAD, LANE),
         pad2(p["w3"], H_PAD, LANE)], axis=0)          # (in_pad + 256, 128)

    def row(a):
        return jnp.pad(a, ((0, 0), (0, LANE - a.shape[1])))

    p_slab = jnp.concatenate(
        [row(p["b1"]), row(p["g1"]), row(p["be1"]),
         row(p["b2"]), row(p["g2"]), row(p["be2"]),
         row(p["b3"]), jnp.zeros((1, LANE), jnp.float32)], axis=0)  # (8, 128)

    return w_slab, p_slab, in_pad, out_size


def init_actor_params(key, input_size, output_size, fc1_units=64, fc2_units=64):
    """Deterministic synthetic init mimicking the PyTorch module's ranges.

    Note: hidden_init() in the reference uses weight.size()[0] (= out_features)
    as 'fan_in'; we reproduce that quirk.  Weights are stored (in, out) so the
    kernel computes x @ W.
    """
    ks = jax.random.split(key, 6)
    lim1, lim2, lim3 = 1.0 / np.sqrt(fc1_units), 1.0 / np.sqrt(fc2_units), 0.003

    w1 = jax.random.uniform(ks[0], (input_size, fc1_units), jnp.float32, -lim1, lim1)
    w2 = jax.random.uniform(ks[1], (fc1_units, fc2_units), jnp.float32, -lim2, lim2)
    w3 = jax.random.uniform(ks[2], (fc2_units, output_size), jnp.float32, -lim3, lim3)

    # PyTorch Linear default bias init: U(-1/sqrt(in_features), 1/sqrt(in_features)).
    b1 = jax.random.uniform(ks[3], (1, fc1_units), jnp.float32,
                            -1.0 / np.sqrt(input_size), 1.0 / np.sqrt(input_size))
    b2 = jax.random.uniform(ks[4], (1, fc2_units), jnp.float32,
                            -1.0 / np.sqrt(fc1_units), 1.0 / np.sqrt(fc1_units))
    b3 = jax.random.uniform(ks[5], (1, output_size), jnp.float32,
                            -1.0 / np.sqrt(fc2_units), 1.0 / np.sqrt(fc2_units))

    g1 = jnp.ones((1, fc1_units), jnp.float32)
    be1 = jnp.zeros((1, fc1_units), jnp.float32)
    g2 = jnp.ones((1, fc2_units), jnp.float32)
    be2 = jnp.zeros((1, fc2_units), jnp.float32)

    return dict(w1=w1, b1=b1, g1=g1, be1=be1,
                w2=w2, b2=b2, g2=g2, be2=be2,
                w3=w3, b3=b3)


def actor_forward_ref(state, p):
    """Pure-JAX reference (same BN formulation) for sanity checking."""
    h = jnp.maximum(state @ p["w1"] + p["b1"], 0.0)
    m = jnp.mean(h, 0, keepdims=True)
    v = jnp.maximum(jnp.mean(h * h, 0, keepdims=True) - m * m, 0.0)
    h = (h - m) * jax.lax.rsqrt(v + BN_EPS) * p["g1"] + p["be1"]
    h = jnp.maximum(h @ p["w2"] + p["b2"], 0.0)
    m = jnp.mean(h, 0, keepdims=True)
    v = jnp.maximum(jnp.mean(h * h, 0, keepdims=True) - m * m, 0.0)
    h = (h - m) * jax.lax.rsqrt(v + BN_EPS) * p["g2"] + p["be2"]
    return jnp.tanh(h @ p["w3"] + p["b3"])


if __name__ == "__main__":
    key = jax.random.PRNGKey(0)
    k_x, k_p = jax.random.split(key)

    # B=128 feeds the MXU full rows and amortizes launch/DMA overhead; BN
    # statistics are taken over this whole batch inside the single kernel call.
    B, INPUT_SIZE, OUTPUT_SIZE = 128, 16, 8
    state = jax.random.normal(k_x, (B, INPUT_SIZE), jnp.float32)
    params = init_actor_params(k_p, INPUT_SIZE, OUTPUT_SIZE)
    w_slab, p_slab, in_pad, out_size = pack_actor_params(params)

    out = actor_forward(state, w_slab, p_slab, in_pad=in_pad, out_size=out_size)
    out = jax.block_until_ready(out)

    ref = actor_forward_ref(state, params)
    np.testing.assert_allclose(np.asarray(out), np.asarray(ref), rtol=1e-5, atol=1e-5)

    print("KERNEL_OK")
</pallas_src>

<mosaic_0001>
module attributes {stable_mosaic.version = 11 : i64} {
  func.func @actor_kernel(%arg0: memref<128x16xf32, #tpu.memory_space<vmem>>, %arg1: memref<272x128xf32, #tpu.memory_space<vmem>>, %arg2: memref<8x128xf32, #tpu.memory_space<vmem>>, %arg3: memref<128x128xf32, #tpu.memory_space<vmem>>) attributes {dimension_semantics = [], scalar_prefetch = 0 : i64, scratch_operands = 0 : i64, tpu.core_type = #tpu.core_type<tc>} {
    %c0 = arith.constant 0 : index
    %c0_0 = arith.constant 0 : index
    %0 = vector.load %arg0[%c0, %c0_0] : memref<128x16xf32, #tpu.memory_space<vmem>>, vector<128x16xf32>
    %c0_1 = arith.constant 0 : index
    %c0_2 = arith.constant 0 : index
    %1 = vector.load %arg1[%c0_1, %c0_2] : memref<272x128xf32, #tpu.memory_space<vmem>>, vector<16x128xf32>
    %c16 = arith.constant 16 : index
    %c0_3 = arith.constant 0 : index
    %2 = vector.load %arg1[%c16, %c0_3] : memref<272x128xf32, #tpu.memory_space<vmem>>, vector<128x128xf32>
    %c144 = arith.constant 144 : index
    %c0_4 = arith.constant 0 : index
    %3 = vector.load %arg1[%c144, %c0_4] : memref<272x128xf32, #tpu.memory_space<vmem>>, vector<128x128xf32>
    %c0_5 = arith.constant 0 : index
    %c0_6 = arith.constant 0 : index
    %4 = vector.load %arg2[%c0_5, %c0_6] : memref<8x128xf32, #tpu.memory_space<vmem>>, vector<1x128xf32>
    %c1 = arith.constant 1 : index
    %c0_7 = arith.constant 0 : index
    %5 = vector.load %arg2[%c1, %c0_7] : memref<8x128xf32, #tpu.memory_space<vmem>>, vector<1x128xf32>
    %c2 = arith.constant 2 : index
    %c0_8 = arith.constant 0 : index
    %6 = vector.load %arg2[%c2, %c0_8] : memref<8x128xf32, #tpu.memory_space<vmem>>, vector<1x128xf32>
    %c3 = arith.constant 3 : index
    %c0_9 = arith.constant 0 : index
    %7 = vector.load %arg2[%c3, %c0_9] : memref<8x128xf32, #tpu.memory_space<vmem>>, vector<1x128xf32>
    %c4 = arith.constant 4 : index
    %c0_10 = arith.constant 0 : index
    %8 = vector.load %arg2[%c4, %c0_10] : memref<8x128xf32, #tpu.memory_space<vmem>>, vector<1x128xf32>
    %c5 = arith.constant 5 : index
    %c0_11 = arith.constant 0 : index
    %9 = vector.load %arg2[%c5, %c0_11] : memref<8x128xf32, #tpu.memory_space<vmem>>, vector<1x128xf32>
    %c6 = arith.constant 6 : index
    %c0_12 = arith.constant 0 : index
    %10 = vector.load %arg2[%c6, %c0_12] : memref<8x128xf32, #tpu.memory_space<vmem>>, vector<1x128xf32>
    %cst = arith.constant dense<0.000000e+00> : vector<128x128xf32>
    %11 = tpu.matmul %0, %1, %cst {dimension_numbers = #tpu.dot_dimension_numbers<[1], [0], [0], [1], [0, 0, 1, 1], [], []>} : vector<128x16xf32>, vector<16x128xf32>, vector<128x128xf32> -> vector<128x128xf32>
    %12 = vector.broadcast %4 : vector<1x128xf32> to vector<128x128xf32>
    %13 = arith.addf %11, %12 : vector<128x128xf32>
    %cst_13 = arith.constant 0.000000e+00 : f32
    %14 = vector.broadcast %cst_13 : f32 to vector<128x128xf32>
    %15 = arith.maximumf %13, %14 : vector<128x128xf32>
    %cst_14 = arith.constant dense<0.000000e+00> : vector<128xf32>
    %16 = vector.multi_reduction <add>, %15, %cst_14 [0] : vector<128x128xf32> to vector<128xf32>
    %17 = vector.shape_cast %16 : vector<128xf32> to vector<1x128xf32>
    %cst_15 = arith.constant 1.280000e+02 : f32
    %18 = vector.broadcast %cst_15 : f32 to vector<1x128xf32>
    %19 = arith.divf %17, %18 : vector<1x128xf32>
    %20 = arith.mulf %15, %15 : vector<128x128xf32>
    %cst_16 = arith.constant dense<0.000000e+00> : vector<128xf32>
    %21 = vector.multi_reduction <add>, %20, %cst_16 [0] : vector<128x128xf32> to vector<128xf32>
    %22 = vector.shape_cast %21 : vector<128xf32> to vector<1x128xf32>
    %cst_17 = arith.constant 1.280000e+02 : f32
    %23 = vector.broadcast %cst_17 : f32 to vector<1x128xf32>
    %24 = arith.divf %22, %23 : vector<1x128xf32>
    %25 = arith.mulf %19, %19 : vector<1x128xf32>
    %26 = arith.subf %24, %25 : vector<1x128xf32>
    %cst_18 = arith.constant 0.000000e+00 : f32
    %27 = vector.broadcast %cst_18 : f32 to vector<1x128xf32>
    %28 = arith.maximumf %26, %27 : vector<1x128xf32>
    %29 = vector.broadcast %19 : vector<1x128xf32> to vector<128x128xf32>
    %30 = arith.subf %15, %29 : vector<128x128xf32>
    %cst_19 = arith.constant 9.99999974E-6 : f32
    %31 = vector.broadcast %cst_19 : f32 to vector<1x128xf32>
    %32 = arith.addf %28, %31 : vector<1x128xf32>
    %33 = math.rsqrt %32 : vector<1x128xf32>
    %34 = vector.broadcast %33 : vector<1x128xf32> to vector<128x128xf32>
    %35 = arith.mulf %30, %34 : vector<128x128xf32>
    %36 = vector.broadcast %5 : vector<1x128xf32> to vector<128x128xf32>
    %37 = arith.mulf %35, %36 : vector<128x128xf32>
    %38 = vector.broadcast %6 : vector<1x128xf32> to vector<128x128xf32>
    %39 = arith.addf %37, %38 : vector<128x128xf32>
    %cst_20 = arith.constant dense<0.000000e+00> : vector<128x128xf32>
    %40 = tpu.matmul %39, %2, %cst_20 {dimension_numbers = #tpu.dot_dimension_numbers<[1], [0], [0], [1], [0, 0, 1, 1], [], []>} : vector<128x128xf32>, vector<128x128xf32>, vector<128x128xf32> -> vector<128x128xf32>
    %41 = vector.broadcast %7 : vector<1x128xf32> to vector<128x128xf32>
    %42 = arith.addf %40, %41 : vector<128x128xf32>
    %cst_21 = arith.constant 0.000000e+00 : f32
    %43 = vector.broadcast %cst_21 : f32 to vector<128x128xf32>
    %44 = arith.maximumf %42, %43 : vector<128x128xf32>
    %cst_22 = arith.constant dense<0.000000e+00> : vector<128xf32>
    %45 = vector.multi_reduction <add>, %44, %cst_22 [0] : vector<128x128xf32> to vector<128xf32>
    %46 = vector.shape_cast %45 : vector<128xf32> to vector<1x128xf32>
    %cst_23 = arith.constant 1.280000e+02 : f32
    %47 = vector.broadcast %cst_23 : f32 to vector<1x128xf32>
    %48 = arith.divf %46, %47 : vector<1x128xf32>
    %49 = arith.mulf %44, %44 : vector<128x128xf32>
    %cst_24 = arith.constant dense<0.000000e+00> : vector<128xf32>
    %50 = vector.multi_reduction <add>, %49, %cst_24 [0] : vector<128x128xf32> to vector<128xf32>
    %51 = vector.shape_cast %50 : vector<128xf32> to vector<1x128xf32>
    %cst_25 = arith.constant 1.280000e+02 : f32
    %52 = vector.broadcast %cst_25 : f32 to vector<1x128xf32>
    %53 = arith.divf %51, %52 : vector<1x128xf32>
    %54 = arith.mulf %48, %48 : vector<1x128xf32>
    %55 = arith.subf %53, %54 : vector<1x128xf32>
    %cst_26 = arith.constant 0.000000e+00 : f32
    %56 = vector.broadcast %cst_26 : f32 to vector<1x128xf32>
    %57 = arith.maximumf %55, %56 : vector<1x128xf32>
    %58 = vector.broadcast %48 : vector<1x128xf32> to vector<128x128xf32>
    %59 = arith.subf %44, %58 : vector<128x128xf32>
    %cst_27 = arith.constant 9.99999974E-6 : f32
    %60 = vector.broadcast %cst_27 : f32 to vector<1x128xf32>
    %61 = arith.addf %57, %60 : vector<1x128xf32>
    %62 = math.rsqrt %61 : vector<1x128xf32>
    %63 = vector.broadcast %62 : vector<1x128xf32> to vector<128x128xf32>
    %64 = arith.mulf %59, %63 : vector<128x128xf32>
    %65 = vector.broadcast %8 : vector<1x128xf32> to vector<128x128xf32>
    %66 = arith.mulf %64, %65 : vector<128x128xf32>
    %67 = vector.broadcast %9 : vector<1x128xf32> to vector<128x128xf32>
    %68 = arith.addf %66, %67 : vector<128x128xf32>
    %cst_28 = arith.constant dense<0.000000e+00> : vector<128x128xf32>
    %69 = tpu.matmul %68, %3, %cst_28 {dimension_numbers = #tpu.dot_dimension_numbers<[1], [0], [0], [1], [0, 0, 1, 1], [], []>} : vector<128x128xf32>, vector<128x128xf32>, vector<128x128xf32> -> vector<128x128xf32>
    %70 = vector.broadcast %10 : vector<1x128xf32> to vector<128x128xf32>
    %71 = arith.addf %69, %70 : vector<128x128xf32>
    %72 = math.tanh %71 : vector<128x128xf32>
    %c0_29 = arith.constant 0 : index
    %c0_30 = arith.constant 0 : index
    %73 = vector.load %arg3[%c0_29, %c0_30] : memref<128x128xf32, #tpu.memory_space<vmem>>, vector<128x128xf32>
    tpu.vector_store %arg3[%c0_29, %c0_30], %72 {strides = array<i32>} : memref<128x128xf32, #tpu.memory_space<vmem>>, vector<128x128xf32>,
    return
  }
}

</mosaic_0001>

<bundles_post_ra>
// kernel: actor_forward.1
= control target key start
LH: loop header
LB: loop body
LE: loop exit
PB: predicated region body
PF: predicated region fallthrough
CT: control target
= control target key end

     0   :  { %8 = vsyncpa [#allocation3], 0  ;;  %s1301_s12 = smov [#allocation2]   ;;  %s1703_s0 = inlined_call_operand.vmem [shape: f32[128,16], index: 0, kind: input, shape index: {}]   ;;  %s1704_s1 = inlined_call_operand.hbm [shape: f32[272,128], index: 1, kind: input, shape index: {}]   ;;  %s1705_s2 = inlined_call_operand.vmem [shape: f32[8,128], index: 2, kind: input, shape index: {}]   ;;  %s1706_s3 = inlined_call_operand.vmem [shape: f32[128,128], index: 3, kind: output, shape index: {}]  }
   0x1   :  { %s16_s13 = sshll.u32 %s1301_s12, 4  ;;  %s1277_s16 = scalar_lea.hbm %s1704_s1, 4352  ;;  %s17_s13 = int_to_ptr.vmem [resolvable:$true] %s16_s13 }
   0x2   :  { %p1278_p0 = scmp.ne.s32.totalorder %s1704_s1, %s1277_s16  ;;  %p1281_p1 = scmp.lt.u32.totalorder %s1277_s16, %s1704_s1 }
   0x4   :  { %p1283_p2 = pnand %p1281_p1, %p1278_p0 }
   0x6   :  { %1286 = shalt.err (!%p1283_p2)
}
   0x7   :  { %s1287_s21 = scalar_lea.vmem %s17_s13, 4352  ;;  %p1292_p4 = scmp.lt.s32.totalorder %s17_s13, %s17_s13 }
   0x8   :  { %p1288_p3 = scmp.ne.s32.totalorder %s17_s13, %s1287_s21  ;;  %p1293_p5 = scmp.lt.s32.totalorder %s1287_s21, %s1287_s21 }
   0xa   :  { %p1294_p6 = por %p1293_p5, %p1292_p4 }
   0xc   :  { %p1295_p7 = pnand %p1294_p6, %p1288_p3 }
   0xe   :  { %1298 = shalt.err (!%p1295_p7)
}
   0xf   :  { %s1302_s22 = smov 128   ;;  %s1303_s23 = smov 8  }
  0x10   :  { %22 = dma.hbm_to_vmem [thread:$0]  %s1704_s1, 4352, %s17_s13, [#allocation3], %s1302_s22, %s1302_s22, %s1303_s23  }
  0x11   :  { %1299 = dma.done.wait [#allocation3], 4352  }
  0x12   :  { %1300 = vsyncadd [#allocation3], 4294962944  ;;  %vm89_vm0 = vcmask 130048   ;;  %v44_v0 = vld [vmem:[#allocation2] sm:$0xff]  ;;  %v45_v1 = vld [vmem:[#allocation2 + $0x8] sm:$0xff] }
  0x13   :  { %v28_v2 = vld [vmem:[%s1703_s0] sm:$0xff]  ;;  %v1170_v3 = vpack.c.bf16 %v45_v1, %v44_v0  ;;  %v29_v4 = vld [vmem:[%s1703_s0 + $0x8] sm:$0xff]  ;;  %v30_v5 = vld [vmem:[%s1703_s0 + $0x10] sm:$0xff] }
  0x14   :  { %1034 = vmatprep.mubr.msk.f32.mxu0 %vm89_vm0, %v28_v2  ;;  %v31_v6 = vld [vmem:[%s1703_s0 + $0x18] sm:$0xff]  ;;  %v32_v7 = vld [vmem:[%s1703_s0 + $0x20] sm:$0xff]  ;;  %v33_v8 = vld [vmem:[%s1703_s0 + $0x28] sm:$0xff] }
  0x15   :  { %1171 = vmatprep.subr.bf16.mxu0 %v1170_v3  ;;  %v34_v9 = vld [vmem:[%s1703_s0 + $0x30] sm:$0xff]  ;;  %v35_v10 = vld [vmem:[%s1703_s0 + $0x38] sm:$0xff]  ;;  %v36_v11 = vld [vmem:[%s1703_s0 + $0x40] sm:$0xff] }
  0x16   :  { %1173 = vmatpush3.bf16.msra.mxu0 %v1170_v3  ;;  %v37_v12 = vld [vmem:[%s1703_s0 + $0x48] sm:$0xff]  ;;  %v38_v13 = vld [vmem:[%s1703_s0 + $0x50] sm:$0xff]  ;;  %v39_v14 = vld [vmem:[%s1703_s0 + $0x58] sm:$0xff] }
  0x17   :  { %v40_v15 = vld [vmem:[%s1703_s0 + $0x60] sm:$0xff]  ;;  %v41_v16 = vld [vmem:[%s1703_s0 + $0x68] sm:$0xff]  ;;  %v42_v17 = vld [vmem:[%s1703_s0 + $0x70] sm:$0xff] }
  0x18   :  { %v43_v18 = vld [vmem:[%s1703_s0 + $0x78] sm:$0xff]  ;;  %v46_v19 = vld [vmem:[#allocation2 + $0x10] sm:$0xff]  ;;  %v48_v22 = vld [vmem:[#allocation2 + $0x20] sm:$0xff] }
  0x19   :  { %1035 = vmatmul.mubr.msk.f32.vlgmr.msra.gmra.mrb[0].mxu0 %vm89_vm0, %v29_v4  ;;  %v47_v20 = vld [vmem:[#allocation2 + $0x18] sm:$0xff]  ;;  %v49_v23 = vld [vmem:[#allocation2 + $0x28] sm:$0xff]  ;;  %v50_v25 = vld [vmem:[#allocation2 + $0x30] sm:$0xff] }
  0x1a   :  { %1037 = vmatprep.mubr.msk.f32.mxu0 %vm89_vm0, %v30_v5  ;;  %v1174_v21 = vpack.c.bf16 %v47_v20, %v46_v19  ;;  %v1178_v24 = vpack.c.bf16 %v49_v23, %v48_v22  ;;  %v51_v26 = vld [vmem:[#allocation2 + $0x38] sm:$0xff]  ;;  %v52_v28 = vld [vmem:[#allocation2 + $0x40] sm:$0xff]  ;;  %v53_v29 = vld [vmem:[#allocation2 + $0x48] sm:$0xff] }
  0x1b   :  { %v1182_v27 = vpack.c.bf16 %v51_v26, %v50_v25  ;;  %v1186_v30 = vpack.c.bf16 %v53_v29, %v52_v28  ;;  %v54_v31 = vld [vmem:[#allocation2 + $0x50] sm:$0xff]  ;;  %v55_v32 = vld [vmem:[#allocation2 + $0x58] sm:$0xff]  ;;  %v56_v34 = vld [vmem:[#allocation2 + $0x60] sm:$0xff] }
  0x1c   :  { %1175 = vmatprep.subr.bf16.mxu1 %v1174_v21  ;;  %v1190_v33 = vpack.c.bf16 %v55_v32, %v54_v31  ;;  %v57_v35 = vld [vmem:[#allocation2 + $0x68] sm:$0xff]  ;;  %v58_v37 = vld [vmem:[#allocation2 + $0x70] sm:$0xff]  ;;  %v59_v38 = vld [vmem:[#allocation2 + $0x78] sm:$0xff] }
  0x1d   :  { %1038 = vmatmul.mubr.msk.f32.gmra.mrb[2].mxu0 %vm89_vm0, %v31_v6  ;;  %1177 = vmatpush3.bf16.msra.mxu1 %v1174_v21  ;;  %v1194_v36 = vpack.c.bf16 %v57_v35, %v56_v34  ;;  %v1198_v39 = vpack.c.bf16 %v59_v38, %v58_v37  ;;  %v60_v40 = vld [vmem:[#allocation2 + $0x80] sm:$0xff]  ;;  %v61_v41 = vld [vmem:[#allocation2 + $0x88] sm:$0xff] }
  0x1e   :  { %1040 = vmatprep.mubr.msk.f32.mxu0 %vm89_vm0, %v32_v7  ;;  %1179 = vmatprep.subr.bf16.mxu1 %v1178_v24  ;;  %v1202_v42 = vpack.c.bf16 %v61_v41, %v60_v40  ;;  %v1403_v43 = vld [vmem:[%s1705_s2] ss:$0 sm:$0xff] }
  0x21   :  { %1041 = vmatmul.mubr.msk.f32.gmra.mrb[4].mxu0 %vm89_vm0, %v33_v8  ;;  %1181 = vmatpush3.bf16.msra.mxu1 %v1178_v24 }
  0x22   :  { %1043 = vmatprep.mubr.msk.f32.mxu0 %vm89_vm0, %v34_v9  ;;  %1183 = vmatprep.subr.bf16.mxu1 %v1182_v27 }
  0x25   :  { %1044 = vmatmul.mubr.msk.f32.gmra.mrb[6].mxu0 %vm89_vm0, %v35_v10  ;;  %1185 = vmatpush3.bf16.msra.mxu1 %v1182_v27 }
  0x26   :  { %1046 = vmatprep.mubr.msk.f32.mxu0 %vm89_vm0, %v36_v11  ;;  %1187 = vmatprep.subr.bf16.mxu1 %v1186_v30 }
  0x29   :  { %1047 = vmatmul.mubr.msk.f32.gmra.mrb[8].mxu0 %vm89_vm0, %v37_v12  ;;  %1189 = vmatpush3.bf16.msra.mxu1 %v1186_v30 }
  0x2a   :  { %1049 = vmatprep.mubr.msk.f32.mxu0 %vm89_vm0, %v38_v13  ;;  %1191 = vmatprep.subr.bf16.mxu1 %v1190_v33 }
  0x2d   :  { %1050 = vmatmul.mubr.msk.f32.gmra.mrb[10].mxu0 %vm89_vm0, %v39_v14  ;;  %1193 = vmatpush3.bf16.msra.mxu1 %v1190_v33 }
  0x2e   :  { %1052 = vmatprep.mubr.msk.f32.mxu0 %vm89_vm0, %v40_v15  ;;  %1195 = vmatprep.subr.bf16.mxu1 %v1194_v36 }
  0x31   :  { %1053 = vmatmul.mubr.msk.f32.gmra.mrb[12].mxu0 %vm89_vm0, %v41_v16  ;;  %1197 = vmatpush3.bf16.msra.mxu1 %v1194_v36 }
  0x32   :  { %1055 = vmatprep.mubr.msk.f32.mxu0 %vm89_vm0, %v42_v17  ;;  %1199 = vmatprep.subr.bf16.mxu1 %v1198_v39 }
  0x35   :  { %1056 = vmatmul.mubr.msk.f32.gmra.mrb[14].mxu0 %vm89_vm0, %v43_v18  ;;  %1201 = vmatpush3.bf16.msra.mxu1 %v1198_v39 }
  0x36   :  { %1203 = vmatprep.subr.bf16.mxu1 %v1202_v42 }
  0x39   :  { %1205 = vmatpush3.bf16.msra.mxu1 %v1202_v42 }
  0xec   :  { %v1036_v44 = vpop.f32.mrb[0].mxu0 }
  0xed   :  { %v210_v45 = vadd.f32 %v1036_v44, %v1403_v43  ;;  %v204_v46 = vpop.f32.mrb[1].mxu0 }
  0xee   :  { %v205_v47 = vadd.f32 %v1403_v43, %v204_v46 }
  0xef   :  { %v1407_v48 = vmax.f32 %v210_v45, 0.0 }
  0xf0   :  { %v1409_v49 = vmax.f32 %v205_v47, 0.0  ;;  %v1039_v50 = vpop.f32.mrb[2].mxu0 }
  0xf1   :  { %v323_v51 = vmul.f32 %v1407_v48, %v1407_v48  ;;  %v220_v52 = vadd.f32 %v1039_v50, %v1403_v43  ;;  %v214_v53 = vpop.f32.mrb[3].mxu0 }
  0xf2   :  { %v299_v54 = vadd.f32 %v1407_v48, %v1409_v49  ;;  %v322_v55 = vmul.f32 %v1409_v49, %v1409_v49  ;;  %v215_v56 = vadd.f32 %v1403_v43, %v214_v53 }
  0xf3   :  { %v1419_v58 = vmax.f32 %v220_v52, 0.0 }
  0xf4   :  { %v338_v57 = vadd.f32 %v323_v51, %v322_v55  ;;  %v1421_v59 = vmax.f32 %v215_v56, 0.0  ;;  %v1042_v60 = vpop.f32.mrb[4].mxu0 }
  0xf5   :  { %v230_v61 = vadd.f32 %v1042_v60, %v1403_v43  ;;  %v224_v62 = vpop.f32.mrb[5].mxu0  ;;  %v325_v3 = vmul.f32 %v1419_v58, %v1419_v58 }
  0xf6   :  { %v300_v63 = vadd.f32 %v299_v54, %v1421_v59  ;;  %v324_v0 = vmul.f32 %v1421_v59, %v1421_v59  ;;  %v225_v1 = vadd.f32 %v1403_v43, %v224_v62 }
  0xf7   :  { %v1428_v2 = vmax.f32 %v230_v61, 0.0 }
  0xf8   :  { %v339_v4 = vadd.f32 %v338_v57, %v324_v0  ;;  %v1432_v5 = vmax.f32 %v225_v1, 0.0  ;;  %v301_v6 = vadd.f32 %v300_v63, %v1419_v58  ;;  %v1045_v7 = vpop.f32.mrb[6].mxu0 }
  0xf9   :  { %v240_v8 = vadd.f32 %v1045_v7, %v1403_v43  ;;  %v234_v9 = vpop.f32.mrb[7].mxu0  ;;  %v327_v14 = vmul.f32 %v1428_v2, %v1428_v2 }
  0xfa   :  { %v302_v10 = vadd.f32 %v301_v6, %v1432_v5  ;;  %v326_v11 = vmul.f32 %v1432_v5, %v1432_v5  ;;  %v340_v12 = vadd.f32 %v339_v4, %v325_v3  ;;  %v235_v13 = vadd.f32 %v1403_v43, %v234_v9 }
  0xfb   :  { %v1442_v16 = vmax.f32 %v240_v8, 0.0 }
  0xfc   :  { %v341_v15 = vadd.f32 %v340_v12, %v326_v11  ;;  %v1444_v17 = vmax.f32 %v235_v13, 0.0  ;;  %v303_v18 = vadd.f32 %v302_v10, %v1428_v2  ;;  %v1048_v19 = vpop.f32.mrb[8].mxu0 }
  0xfd   :  { %v250_v20 = vadd.f32 %v1048_v19, %v1403_v43  ;;  %v244_v21 = vpop.f32.mrb[9].mxu0  ;;  %v329_v27 = vmul.f32 %v1442_v16, %v1442_v16 }
  0xfe   :  { %v304_v22 = vadd.f32 %v303_v18, %v1444_v17  ;;  %v328_v23 = vmul.f32 %v1444_v17, %v1444_v17  ;;  %v342_v24 = vadd.f32 %v341_v15, %v327_v14  ;;  %v245_v25 = vadd.f32 %v1403_v43, %v244_v21 }
  0xff   :  { %v1452_v26 = vmax.f32 %v250_v20, 0.0 }
 0x100   :  { %v343_v28 = vadd.f32 %v342_v24, %v328_v23  ;;  %v1456_v29 = vmax.f32 %v245_v25, 0.0  ;;  %v305_v30 = vadd.f32 %v304_v22, %v1442_v16  ;;  %v1051_v31 = vpop.f32.mrb[10].mxu0 }
 0x101   :  { %v260_v32 = vadd.f32 %v1051_v31, %v1403_v43  ;;  %v254_v33 = vpop.f32.mrb[11].mxu0  ;;  %v331_v38 = vmul.f32 %v1452_v26, %v1452_v26 }
 0x102   :  { %v306_v34 = vadd.f32 %v305_v30, %v1456_v29  ;;  %v330_v35 = vmul.f32 %v1456_v29, %v1456_v29  ;;  %v344_v36 = vadd.f32 %v343_v28, %v329_v27  ;;  %v255_v37 = vadd.f32 %v1403_v43, %v254_v33 }
 0x103   :  { %v1466_v40 = vmax.f32 %v260_v32, 0.0 }
 0x104   :  { %v345_v39 = vadd.f32 %v344_v36, %v330_v35  ;;  %v1468_v41 = vmax.f32 %v255_v37, 0.0  ;;  %v307_v42 = vadd.f32 %v306_v34, %v1452_v26  ;;  %v1054_v44 = vpop.f32.mrb[12].mxu0 }
 0x105   :  { %v270_v45 = vadd.f32 %v1054_v44, %v1403_v43  ;;  %v264_v46 = vpop.f32.mrb[13].mxu0  ;;  %v333_v54 = vmul.f32 %v1466_v40, %v1466_v40 }
 0x106   :  { %v308_v47 = vadd.f32 %v307_v42, %v1468_v41  ;;  %v332_v50 = vmul.f32 %v1468_v41, %v1468_v41  ;;  %v346_v51 = vadd.f32 %v345_v39, %v331_v38  ;;  %v265_v52 = vadd.f32 %v1403_v43, %v264_v46 }
 0x107   :  { %v1476_v53 = vmax.f32 %v270_v45, 0.0 }
 0x108   :  { %v347_v55 = vadd.f32 %v346_v51, %v332_v50  ;;  %v1480_v56 = vmax.f32 %v265_v52, 0.0  ;;  %v309_v57 = vadd.f32 %v308_v47, %v1466_v40  ;;  %v1057_v60 = vpop.f32.mrb[14].mxu0 }
 0x109   :  { %v280_v61 = vadd.f32 %v1057_v60, %v1403_v43  ;;  %v274_v62 = vpop.f32.mrb[15].mxu0  ;;  %v335_v4 = vmul.f32 %v1476_v53, %v1476_v53 }
 0x10a   :  { %v310_v63 = vadd.f32 %v309_v57, %v1480_v56  ;;  %v334_v0 = vmul.f32 %v1480_v56, %v1480_v56  ;;  %v348_v1 = vadd.f32 %v347_v55, %v333_v54  ;;  %v275_v3 = vadd.f32 %v1403_v43, %v274_v62 }
 0x10b   :  { %v1490_v7 = vmax.f32 %v280_v61, 0.0 }
 0x10c   :  { %v349_v6 = vadd.f32 %v348_v1, %v334_v0  ;;  %v297_v8 = vmax.f32 %v275_v3, 0.0  ;;  %v311_v9 = vadd.f32 %v310_v63, %v1476_v53 }
 0x10d   :  { %v337_v13 = vmul.f32 %v1490_v7, %v1490_v7 }
 0x10e   :  { %v312_v10 = vadd.f32 %v311_v9, %v297_v8  ;;  %v336_v11 = vmul.f32 %v297_v8, %v297_v8  ;;  %v350_v12 = vadd.f32 %v349_v6, %v335_v4 }
 0x110   :  { %v313_v14 = vadd.f32 %v312_v10, %v1490_v7  ;;  %v351_v15 = vadd.f32 %v350_v12, %v336_v11 }
 0x112   :  { %v314_v18 = vrot.slane %v313_v14, 4  ;;  %v352_v43 = vadd.f32 %v351_v15, %v337_v13 }
 0x114   :  { %v315_v19 = vadd.f32 %v314_v18, %v313_v14  ;;  %v353_v20 = vrot.slane %v352_v43, 4 }
 0x116   :  { %v316_v21 = vrot.slane %v315_v19, 2  ;;  %v354_v22 = vadd.f32 %v353_v20, %v352_v43 }
 0x118   :  { %v317_v23 = vadd.f32 %v316_v21, %v315_v19  ;;  %v355_v24 = vrot.slane %v354_v22, 2 }
 0x11a   :  { %v318_v25 = vrot.slane %v317_v23, 1  ;;  %v356_v27 = vadd.f32 %v355_v24, %v354_v22 }
 0x11c   :  { %v319_v28 = vadd.f32 %v318_v25, %v317_v23  ;;  %v357_v30 = vrot.slane %v356_v27, 1 }
 0x11e   :  { %v321_v31 = vmul.f32 0.0078125, %v319_v28  ;;  %v358_v32 = vadd.f32 %v357_v30, %v356_v27 }
 0x120   :  { %v359_v33 = vmul.f32 0.0078125, %v358_v32  ;;  %v360_v34 = vmul.f32 %v321_v31, %v321_v31  ;;  %v377_v35 = vsub.f32 %v297_v8, %v321_v31  ;;  %v363_v36 = vsub.f32 %v1409_v49, %v321_v31 }
 0x121   :  { %v364_v37 = vsub.f32 %v1407_v48, %v321_v31  ;;  %v365_v38 = vsub.f32 %v1421_v59, %v321_v31  ;;  %v366_v39 = vsub.f32 %v1419_v58, %v321_v31  ;;  %v367_v42 = vsub.f32 %v1432_v5, %v321_v31 }
 0x122   :  { %v361_v44 = vsub.f32 %v359_v33, %v360_v34  ;;  %v368_v45 = vsub.f32 %v1428_v2, %v321_v31  ;;  %v369_v46 = vsub.f32 %v1444_v17, %v321_v31  ;;  %v370_v47 = vsub.f32 %v1442_v16, %v321_v31  ;;  %v942_v16 = vld [vmem:[%s1705_s2 + $0x1] ss:$0 sm:$0xff] }
 0x123   :  { %v371_v50 = vsub.f32 %v1456_v29, %v321_v31  ;;  %v372_v51 = vsub.f32 %v1452_v26, %v321_v31  ;;  %v373_v49 = vsub.f32 %v1468_v41, %v321_v31  ;;  %v374_v48 = vsub.f32 %v1466_v40, %v321_v31  ;;  %v943_v40 = vld [vmem:[%s1705_s2 + $0x2] ss:$0 sm:$0xff] }
 0x124   :  { %v362_v59 = vmax.f32 %v361_v44, 0.0  ;;  %v375_v58 = vsub.f32 %v1480_v56, %v321_v31  ;;  %v376_v5 = vsub.f32 %v1476_v53, %v321_v31  ;;  %v378_v52 = vsub.f32 %v1490_v7, %v321_v31  ;;  %v62_v44 = vld [vmem:[#allocation2 + $0x90] sm:$0xff] }
 0x126   :  { %v379_v2 = vadd.f32 1e-05, %v362_v59 }
 0x128   :  { %1241 = vrsqrt.f32 %v379_v2  ;;  %v70_v2 = vld [vmem:[#allocation2 + $0xd0] sm:$0xff] }
 0x132   :  { %v1242_v17 = vpop.eup %1241 }
 0x133   :  { %v395_v29 = vmul.f32 %v1242_v17, %v377_v35  ;;  %v381_v26 = vmul.f32 %v1242_v17, %v363_v36  ;;  %v382_v54 = vmul.f32 %v1242_v17, %v364_v37  ;;  %v383_v41 = vmul.f32 %v1242_v17, %v365_v38 }
 0x134   :  { %v384_v55 = vmul.f32 %v1242_v17, %v366_v39  ;;  %v385_v56 = vmul.f32 %v1242_v17, %v367_v42  ;;  %v386_v53 = vmul.f32 %v1242_v17, %v368_v45  ;;  %v387_v57 = vmul.f32 %v1242_v17, %v369_v46  ;;  %v63_v45 = vld [vmem:[#allocation2 + $0x98] sm:$0xff] }
 0x135   :  { %v401_v60 = vmul.f32 %v942_v16, %v381_v26  ;;  %v402_v61 = vmul.f32 %v942_v16, %v382_v54  ;;  %v403_v62 = vmul.f32 %v942_v16, %v383_v41  ;;  %v388_v63 = vmul.f32 %v1242_v17, %v370_v47  ;;  %v64_v47 = vld [vmem:[#allocation2 + $0xa0] sm:$0xff]  ;;  %v73_v26 = vld [vmem:[#allocation2 + $0xe8] sm:$0xff]  ;;  %v74_v54 = vld [vmem:[#allocation2 + $0xf0] sm:$0xff] }
 0x136   :  { %v404_v3 = vmul.f32 %v942_v16, %v384_v55  ;;  %v405_v4 = vmul.f32 %v942_v16, %v385_v56  ;;  %v389_v7 = vmul.f32 %v1242_v17, %v371_v50  ;;  %v390_v8 = vmul.f32 %v1242_v17, %v372_v51  ;;  %v65_v50 = vld [vmem:[#allocation2 + $0xa8] sm:$0xff]  ;;  %v76_v56 = vld [vmem:[#allocation2 + $0x100] sm:$0xff] }
 0x137   :  { %v421_v0 = vadd.f32 %v943_v40, %v401_v60  ;;  %v422_v1 = vadd.f32 %v943_v40, %v402_v61  ;;  %v423_v6 = vadd.f32 %v943_v40, %v403_v62  ;;  %v391_v9 = vmul.f32 %v1242_v17, %v373_v49  ;;  %v66_v49 = vld [vmem:[#allocation2 + $0xb0] sm:$0xff]  ;;  %v1520_v60 = vld [vmem:[%s1705_s2 + $0x3] ss:$0 sm:$0xff] }
 0x138   :  { %v392_v10 = vmul.f32 %v1242_v17, %v374_v48  ;;  %v393_v11 = vmul.f32 %v1242_v17, %v375_v58  ;;  %v394_v12 = vmul.f32 %v1242_v17, %v376_v5  ;;  %v396_v13 = vmul.f32 %v1242_v17, %v378_v52  ;;  %v67_v48 = vld [vmem:[#allocation2 + $0xb8] sm:$0xff]  ;;  %v68_v58 = vld [vmem:[#allocation2 + $0xc0] sm:$0xff]  ;;  %v69_v5 = vld [vmem:[#allocation2 + $0xc8] sm:$0xff] }
 0x139   :  { %1090 = vmatprep.mubr.f32.mxu1 %v421_v0  ;;  %v424_v14 = vadd.f32 %v943_v40, %v404_v3  ;;  %v406_v15 = vmul.f32 %v942_v16, %v386_v53  ;;  %v425_v18 = vadd.f32 %v943_v40, %v405_v4  ;;  %v407_v43 = vmul.f32 %v942_v16, %v387_v57  ;;  %v71_v17 = vld [vmem:[#allocation2 + $0xd8] sm:$0xff]  ;;  %v77_v53 = vld [vmem:[#allocation2 + $0x108] sm:$0xff] }
 0x13a   :  { %1091 = vmatmul.mubr.f32.vlgmr.msra.gmra.mrb[0].mxu1 %v422_v1  ;;  %v408_v20 = vmul.f32 %v942_v16, %v388_v63  ;;  %v409_v22 = vmul.f32 %v942_v16, %v389_v7  ;;  %v410_v24 = vmul.f32 %v942_v16, %v390_v8  ;;  %v411_v27 = vmul.f32 %v942_v16, %v391_v9 }
 0x13b   :  { %1093 = vmatprep.mubr.f32.mxu1 %v423_v6  ;;  %v426_v19 = vadd.f32 %v943_v40, %v406_v15  ;;  %v427_v21 = vadd.f32 %v943_v40, %v407_v43  ;;  %v412_v30 = vmul.f32 %v942_v16, %v392_v10  ;;  %v413_v32 = vmul.f32 %v942_v16, %v393_v11 }
 0x13c   :  { %v428_v23 = vadd.f32 %v943_v40, %v408_v20  ;;  %v429_v25 = vadd.f32 %v943_v40, %v409_v22  ;;  %v430_v28 = vadd.f32 %v943_v40, %v410_v24  ;;  %v431_v31 = vadd.f32 %v943_v40, %v411_v27 }
 0x13d   :  { %v432_v33 = vadd.f32 %v943_v40, %v412_v30  ;;  %v414_v34 = vmul.f32 %v942_v16, %v394_v12  ;;  %v433_v35 = vadd.f32 %v943_v40, %v413_v32  ;;  %v415_v36 = vmul.f32 %v942_v16, %v395_v29  ;;  %v72_v29 = vld [vmem:[#allocation2 + $0xe0] sm:$0xff] }
 0x13e   :  { %1094 = vmatmul.mubr.f32.gmra.mrb[2].mxu1 %v424_v14  ;;  %v416_v38 = vmul.f32 %v942_v16, %v396_v13  ;;  %v1206_v46 = vpack.c.bf16 %v63_v45, %v62_v44  ;;  %v1210_v51 = vpack.c.bf16 %v65_v50, %v64_v47  ;;  %v1214_v59 = vpack.c.bf16 %v67_v48, %v66_v49 }
 0x13f   :  { %1096 = vmatprep.mubr.f32.mxu1 %v425_v18  ;;  %v434_v37 = vadd.f32 %v943_v40, %v414_v34  ;;  %v435_v39 = vadd.f32 %v943_v40, %v415_v36  ;;  %v1218_v52 = vpack.c.bf16 %v69_v5, %v68_v58  ;;  %v1222_v16 = vpack.c.bf16 %v71_v17, %v70_v2 }
 0x140   :  { %v436_v42 = vadd.f32 %v943_v40, %v416_v38  ;;  %1207 = vmatprep.subr.bf16.mxu0 %v1206_v46  ;;  %v1226_v41 = vpack.c.bf16 %v73_v26, %v72_v29  ;;  %v75_v40 = vld [vmem:[#allocation2 + $0xf8] sm:$0xff]  ;;  %v1234_v57 = vpack.c.bf16 %v77_v53, %v76_v56 }
 0x141   :  { %1209 = vmatpush3.bf16.msra.mxu0 %v1206_v46  ;;  %v1230_v55 = vpack.c.bf16 %v75_v40, %v74_v54 }
 0x142   :  { %1097 = vmatmul.mubr.f32.gmra.mrb[4].mxu1 %v426_v19  ;;  %1211 = vmatprep.subr.bf16.mxu0 %v1210_v51 }
 0x143   :  { %1099 = vmatprep.mubr.f32.mxu1 %v427_v21 }
 0x145   :  { %1213 = vmatpush3.bf16.msra.mxu0 %v1210_v51 }
 0x146   :  { %1100 = vmatmul.mubr.f32.gmra.mrb[6].mxu1 %v428_v23  ;;  %1215 = vmatprep.subr.bf16.mxu0 %v1214_v59 }
 0x147   :  { %1102 = vmatprep.mubr.f32.mxu1 %v429_v25 }
 0x149   :  { %1217 = vmatpush3.bf16.msra.mxu0 %v1214_v59 }
 0x14a   :  { %1103 = vmatmul.mubr.f32.gmra.mrb[8].mxu1 %v430_v28  ;;  %1219 = vmatprep.subr.bf16.mxu0 %v1218_v52 }
 0x14b   :  { %1105 = vmatprep.mubr.f32.mxu1 %v431_v31 }
 0x14d   :  { %1221 = vmatpush3.bf16.msra.mxu0 %v1218_v52 }
 0x14e   :  { %1106 = vmatmul.mubr.f32.gmra.mrb[10].mxu1 %v432_v33  ;;  %1223 = vmatprep.subr.bf16.mxu0 %v1222_v16 }
 0x14f   :  { %1108 = vmatprep.mubr.f32.mxu1 %v433_v35 }
 0x151   :  { %1225 = vmatpush3.bf16.msra.mxu0 %v1222_v16 }
 0x152   :  { %1109 = vmatmul.mubr.f32.gmra.mrb[12].mxu1 %v434_v37  ;;  %1227 = vmatprep.subr.bf16.mxu0 %v1226_v41 }
 0x153   :  { %1111 = vmatprep.mubr.f32.mxu1 %v435_v39 }
 0x155   :  { %1229 = vmatpush3.bf16.msra.mxu0 %v1226_v41 }
 0x156   :  { %1112 = vmatmul.mubr.f32.gmra.mrb[14].mxu1 %v436_v42  ;;  %1231 = vmatprep.subr.bf16.mxu0 %v1230_v55 }
 0x159   :  { %1233 = vmatpush3.bf16.msra.mxu0 %v1230_v55 }
 0x15a   :  { %1235 = vmatprep.subr.bf16.mxu0 %v1234_v57 }
 0x15d   :  { %1237 = vmatpush3.bf16.msra.mxu0 %v1234_v57 }
 0x20d   :  { %v1092_v61 = vpop.f32.mrb[0].mxu1 }
 0x20e   :  { %v513_v62 = vadd.f32 %v1092_v61, %v1520_v60  ;;  %v507_v63 = vpop.f32.mrb[1].mxu1 }
 0x20f   :  { %v508_v0 = vadd.f32 %v1520_v60, %v507_v63 }
 0x210   :  { %v1524_v1 = vmax.f32 %v513_v62, 0.0 }
 0x211   :  { %v1526_v3 = vmax.f32 %v508_v0, 0.0  ;;  %v1095_v4 = vpop.f32.mrb[2].mxu1 }
 0x212   :  { %v625_v6 = vmul.f32 %v1524_v1, %v1524_v1  ;;  %v523_v7 = vadd.f32 %v1095_v4, %v1520_v60  ;;  %v517_v8 = vpop.f32.mrb[3].mxu1 }
 0x213   :  { %v602_v9 = vadd.f32 %v1524_v1, %v1526_v3  ;;  %v624_v10 = vmul.f32 %v1526_v3, %v1526_v3  ;;  %v518_v11 = vadd.f32 %v1520_v60, %v517_v8 }
 0x214   :  { %v1536_v13 = vmax.f32 %v523_v7, 0.0 }
 0x215   :  { %v640_v12 = vadd.f32 %v625_v6, %v624_v10  ;;  %v1538_v14 = vmax.f32 %v518_v11, 0.0  ;;  %v1098_v15 = vpop.f32.mrb[4].mxu1 }
 0x216   :  { %v533_v18 = vadd.f32 %v1098_v15, %v1520_v60  ;;  %v527_v43 = vpop.f32.mrb[5].mxu1  ;;  %v627_v23 = vmul.f32 %v1536_v13, %v1536_v13 }
 0x217   :  { %v603_v19 = vadd.f32 %v602_v9, %v1538_v14  ;;  %v626_v20 = vmul.f32 %v1538_v14, %v1538_v14  ;;  %v528_v21 = vadd.f32 %v1520_v60, %v527_v43 }
 0x218   :  { %v1545_v22 = vmax.f32 %v533_v18, 0.0 }
 0x219   :  { %v641_v24 = vadd.f32 %v640_v12, %v626_v20  ;;  %v1549_v25 = vmax.f32 %v528_v21, 0.0  ;;  %v604_v27 = vadd.f32 %v603_v19, %v1536_v13  ;;  %v1101_v28 = vpop.f32.mrb[6].mxu1 }
 0x21a   :  { %v543_v30 = vadd.f32 %v1101_v28, %v1520_v60  ;;  %v537_v31 = vpop.f32.mrb[7].mxu1  ;;  %v629_v36 = vmul.f32 %v1545_v22, %v1545_v22 }
 0x21b   :  { %v605_v32 = vadd.f32 %v604_v27, %v1549_v25  ;;  %v628_v33 = vmul.f32 %v1549_v25, %v1549_v25  ;;  %v642_v34 = vadd.f32 %v641_v24, %v627_v23  ;;  %v538_v35 = vadd.f32 %v1520_v60, %v537_v31 }
 0x21c   :  { %v1559_v38 = vmax.f32 %v543_v30, 0.0 }
 0x21d   :  { %v643_v37 = vadd.f32 %v642_v34, %v628_v33  ;;  %v1561_v39 = vmax.f32 %v538_v35, 0.0  ;;  %v606_v42 = vadd.f32 %v605_v32, %v1545_v22  ;;  %v1104_v44 = vpop.f32.mrb[8].mxu1 }
 0x21e   :  { %v553_v45 = vadd.f32 %v1104_v44, %v1520_v60  ;;  %v547_v46 = vpop.f32.mrb[9].mxu1  ;;  %v631_v59 = vmul.f32 %v1559_v38, %v1559_v38 }
 0x21f   :  { %v607_v47 = vadd.f32 %v606_v42, %v1561_v39  ;;  %v630_v50 = vmul.f32 %v1561_v39, %v1561_v39  ;;  %v644_v51 = vadd.f32 %v643_v37, %v629_v36  ;;  %v548_v49 = vadd.f32 %v1520_v60, %v547_v46 }
 0x220   :  { %v1569_v48 = vmax.f32 %v553_v45, 0.0 }
 0x221   :  { %v645_v58 = vadd.f32 %v644_v51, %v630_v50  ;;  %v1573_v5 = vmax.f32 %v548_v49, 0.0  ;;  %v608_v52 = vadd.f32 %v607_v47, %v1559_v38  ;;  %v1107_v2 = vpop.f32.mrb[10].mxu1 }
 0x222   :  { %v563_v17 = vadd.f32 %v1107_v2, %v1520_v60  ;;  %v557_v16 = vpop.f32.mrb[11].mxu1  ;;  %v633_v40 = vmul.f32 %v1569_v48, %v1569_v48 }
 0x223   :  { %v609_v29 = vadd.f32 %v608_v52, %v1573_v5  ;;  %v632_v26 = vmul.f32 %v1573_v5, %v1573_v5  ;;  %v646_v54 = vadd.f32 %v645_v58, %v631_v59  ;;  %v558_v41 = vadd.f32 %v1520_v60, %v557_v16 }
 0x224   :  { %v1583_v56 = vmax.f32 %v563_v17, 0.0 }
 0x225   :  { %v647_v55 = vadd.f32 %v646_v54, %v632_v26  ;;  %v1585_v53 = vmax.f32 %v558_v41, 0.0  ;;  %v610_v57 = vadd.f32 %v609_v29, %v1569_v48  ;;  %v1110_v61 = vpop.f32.mrb[12].mxu1 }
 0x226   :  { %v573_v62 = vadd.f32 %v1110_v61, %v1520_v60  ;;  %v567_v63 = vpop.f32.mrb[13].mxu1  ;;  %v635_v9 = vmul.f32 %v1583_v56, %v1583_v56 }
 0x227   :  { %v611_v0 = vadd.f32 %v610_v57, %v1585_v53  ;;  %v634_v4 = vmul.f32 %v1585_v53, %v1585_v53  ;;  %v648_v6 = vadd.f32 %v647_v55, %v633_v40  ;;  %v568_v7 = vadd.f32 %v1520_v60, %v567_v63 }
 0x228   :  { %v1593_v8 = vmax.f32 %v573_v62, 0.0 }
 0x229   :  { %v649_v10 = vadd.f32 %v648_v6, %v634_v4  ;;  %v1597_v11 = vmax.f32 %v568_v7, 0.0  ;;  %v612_v12 = vadd.f32 %v611_v0, %v1583_v56  ;;  %v1113_v15 = vpop.f32.mrb[14].mxu1 }
 0x22a   :  { %v583_v18 = vadd.f32 %v1113_v15, %v1520_v60  ;;  %v577_v43 = vpop.f32.mrb[15].mxu1  ;;  %v637_v24 = vmul.f32 %v1593_v8, %v1593_v8 }
 0x22b   :  { %v613_v19 = vadd.f32 %v612_v12, %v1597_v11  ;;  %v636_v20 = vmul.f32 %v1597_v11, %v1597_v11  ;;  %v650_v21 = vadd.f32 %v649_v10, %v635_v9  ;;  %v578_v23 = vadd.f32 %v1520_v60, %v577_v43 }
 0x22c   :  { %v1607_v28 = vmax.f32 %v583_v18, 0.0 }
 0x22d   :  { %v651_v27 = vadd.f32 %v650_v21, %v636_v20  ;;  %v600_v30 = vmax.f32 %v578_v23, 0.0  ;;  %v614_v31 = vadd.f32 %v613_v19, %v1593_v8 }
 0x22e   :  { %v639_v35 = vmul.f32 %v1607_v28, %v1607_v28 }
 0x22f   :  { %v615_v32 = vadd.f32 %v614_v31, %v600_v30  ;;  %v638_v33 = vmul.f32 %v600_v30, %v600_v30  ;;  %v652_v34 = vadd.f32 %v651_v27, %v637_v24 }
 0x231   :  { %v616_v36 = vadd.f32 %v615_v32, %v1607_v28  ;;  %v653_v37 = vadd.f32 %v652_v34, %v638_v33 }
 0x233   :  { %v617_v42 = vrot.slane %v616_v36, 4  ;;  %v654_v60 = vadd.f32 %v653_v37, %v639_v35 }
 0x235   :  { %v618_v44 = vadd.f32 %v617_v42, %v616_v36  ;;  %v655_v45 = vrot.slane %v654_v60, 4 }
 0x237   :  { %v619_v46 = vrot.slane %v618_v44, 2  ;;  %v656_v47 = vadd.f32 %v655_v45, %v654_v60 }
 0x239   :  { %v620_v50 = vadd.f32 %v619_v46, %v618_v44  ;;  %v657_v51 = vrot.slane %v656_v47, 2 }
 0x23b   :  { %v621_v49 = vrot.slane %v620_v50, 1  ;;  %v658_v59 = vadd.f32 %v657_v51, %v656_v47 }
 0x23d   :  { %v622_v58 = vadd.f32 %v621_v49, %v620_v50  ;;  %v659_v52 = vrot.slane %v658_v59, 1 }
 0x23f   :  { %v623_v2 = vmul.f32 0.0078125, %v622_v58  ;;  %v660_v17 = vadd.f32 %v659_v52, %v658_v59 }
 0x241   :  { %v661_v16 = vmul.f32 0.0078125, %v660_v17  ;;  %v662_v29 = vmul.f32 %v623_v2, %v623_v2  ;;  %v679_v26 = vsub.f32 %v600_v30, %v623_v2  ;;  %v665_v54 = vsub.f32 %v1526_v3, %v623_v2 }
 0x242   :  { %v666_v41 = vsub.f32 %v1524_v1, %v623_v2  ;;  %v667_v40 = vsub.f32 %v1538_v14, %v623_v2  ;;  %v668_v55 = vsub.f32 %v1536_v13, %v623_v2  ;;  %v669_v57 = vsub.f32 %v1549_v25, %v623_v2 }
 0x243   :  { %v663_v61 = vsub.f32 %v661_v16, %v662_v29  ;;  %v670_v62 = vsub.f32 %v1545_v22, %v623_v2  ;;  %v671_v63 = vsub.f32 %v1561_v39, %v623_v2  ;;  %v672_v0 = vsub.f32 %v1559_v38, %v623_v2  ;;  %v945_v38 = vld [vmem:[%s1705_s2 + $0x4] ss:$0 sm:$0xff] }
 0x244   :  { %v673_v4 = vsub.f32 %v1573_v5, %v623_v2  ;;  %v674_v6 = vsub.f32 %v1569_v48, %v623_v2  ;;  %v675_v3 = vsub.f32 %v1585_v53, %v623_v2  ;;  %v676_v1 = vsub.f32 %v1583_v56, %v623_v2  ;;  %v946_v56 = vld [vmem:[%s1705_s2 + $0x5] ss:$0 sm:$0xff] }
 0x245   :  { %v664_v14 = vmax.f32 %v663_v61, 0.0  ;;  %v677_v13 = vsub.f32 %v1597_v11, %v623_v2  ;;  %v678_v25 = vsub.f32 %v1593_v8, %v623_v2  ;;  %v680_v7 = vsub.f32 %v1607_v28, %v623_v2  ;;  %v1637_v61 = vld [vmem:[%s1705_s2 + $0x6] ss:$0 sm:$0xff] }
 0x247   :  { %v681_v22 = vadd.f32 1e-05, %v664_v14 }
 0x249   :  { %1243 = vrsqrt.f32 %v681_v22 }
 0x253   :  { %v1244_v39 = vpop.eup %1243 }
 0x254   :  { %v697_v5 = vmul.f32 %v1244_v39, %v679_v26  ;;  %v683_v48 = vmul.f32 %v1244_v39, %v665_v54  ;;  %v684_v9 = vmul.f32 %v1244_v39, %v666_v41  ;;  %v685_v53 = vmul.f32 %v1244_v39, %v667_v40 }
 0x255   :  { %v686_v10 = vmul.f32 %v1244_v39, %v668_v55  ;;  %v687_v11 = vmul.f32 %v1244_v39, %v669_v57  ;;  %v688_v8 = vmul.f32 %v1244_v39, %v670_v62  ;;  %v689_v12 = vmul.f32 %v1244_v39, %v671_v63 }
 0x256   :  { %v703_v15 = vmul.f32 %v945_v38, %v683_v48  ;;  %v704_v18 = vmul.f32 %v945_v38, %v684_v9  ;;  %v705_v43 = vmul.f32 %v945_v38, %v685_v53  ;;  %v690_v19 = vmul.f32 %v1244_v39, %v672_v0 }
 0x257   :  { %v706_v23 = vmul.f32 %v945_v38, %v686_v10  ;;  %v707_v24 = vmul.f32 %v945_v38, %v687_v11  ;;  %v691_v28 = vmul.f32 %v1244_v39, %v673_v4  ;;  %v692_v30 = vmul.f32 %v1244_v39, %v674_v6 }
 0x258   :  { %v723_v20 = vadd.f32 %v946_v56, %v703_v15  ;;  %v724_v21 = vadd.f32 %v946_v56, %v704_v18  ;;  %v725_v27 = vadd.f32 %v946_v56, %v705_v43  ;;  %v693_v31 = vmul.f32 %v1244_v39, %v675_v3 }
 0x259   :  { %v694_v32 = vmul.f32 %v1244_v39, %v676_v1  ;;  %v695_v33 = vmul.f32 %v1244_v39, %v677_v13  ;;  %v696_v34 = vmul.f32 %v1244_v39, %v678_v25  ;;  %v698_v35 = vmul.f32 %v1244_v39, %v680_v7 }
 0x25a   :  { %1146 = vmatprep.mubr.f32.mxu0 %v723_v20  ;;  %v726_v36 = vadd.f32 %v946_v56, %v706_v23  ;;  %v708_v37 = vmul.f32 %v945_v38, %v688_v8  ;;  %v727_v42 = vadd.f32 %v946_v56, %v707_v24  ;;  %v709_v60 = vmul.f32 %v945_v38, %v689_v12 }
 0x25b   :  { %1147 = vmatmul.mubr.f32.vlgmr.msra.gmra.mrb[16].mxu0 %v724_v21  ;;  %v710_v45 = vmul.f32 %v945_v38, %v690_v19  ;;  %v711_v47 = vmul.f32 %v945_v38, %v691_v28  ;;  %v712_v51 = vmul.f32 %v945_v38, %v692_v30  ;;  %v713_v59 = vmul.f32 %v945_v38, %v693_v31 }
 0x25c   :  { %1149 = vmatprep.mubr.f32.mxu0 %v725_v27  ;;  %v728_v44 = vadd.f32 %v946_v56, %v708_v37  ;;  %v729_v46 = vadd.f32 %v946_v56, %v709_v60  ;;  %v714_v52 = vmul.f32 %v945_v38, %v694_v32  ;;  %v715_v17 = vmul.f32 %v945_v38, %v695_v33 }
 0x25d   :  { %v730_v50 = vadd.f32 %v946_v56, %v710_v45  ;;  %v731_v49 = vadd.f32 %v946_v56, %v711_v47  ;;  %v732_v58 = vadd.f32 %v946_v56, %v712_v51  ;;  %v733_v2 = vadd.f32 %v946_v56, %v713_v59 }
 0x25e   :  { %v734_v16 = vadd.f32 %v946_v56, %v714_v52  ;;  %v716_v29 = vmul.f32 %v945_v38, %v696_v34  ;;  %v735_v26 = vadd.f32 %v946_v56, %v715_v17  ;;  %v717_v54 = vmul.f32 %v945_v38, %v697_v5 }
 0x25f   :  { %1150 = vmatmul.mubr.f32.gmra.mrb[18].mxu0 %v726_v36  ;;  %v718_v40 = vmul.f32 %v945_v38, %v698_v35 }
 0x260   :  { %1152 = vmatprep.mubr.f32.mxu0 %v727_v42  ;;  %v736_v41 = vadd.f32 %v946_v56, %v716_v29  ;;  %v737_v55 = vadd.f32 %v946_v56, %v717_v54 }
 0x261   :  { %v738_v57 = vadd.f32 %v946_v56, %v718_v40 }
 0x263   :  { %1153 = vmatmul.mubr.f32.gmra.mrb[20].mxu0 %v728_v44 }
 0x264   :  { %1155 = vmatprep.mubr.f32.mxu0 %v729_v46 }
 0x267   :  { %1156 = vmatmul.mubr.f32.gmra.mrb[22].mxu0 %v730_v50 }
 0x268   :  { %1158 = vmatprep.mubr.f32.mxu0 %v731_v49 }
 0x26b   :  { %1159 = vmatmul.mubr.f32.gmra.mrb[24].mxu0 %v732_v58 }
 0x26c   :  { %1161 = vmatprep.mubr.f32.mxu0 %v733_v2 }
 0x26f   :  { %1162 = vmatmul.mubr.f32.gmra.mrb[26].mxu0 %v734_v16 }
 0x270   :  { %1164 = vmatprep.mubr.f32.mxu0 %v735_v26 }
 0x273   :  { %1165 = vmatmul.mubr.f32.gmra.mrb[28].mxu0 %v736_v41 }
 0x274   :  { %1167 = vmatprep.mubr.f32.mxu0 %v737_v55 }
 0x277   :  { %1168 = vmatmul.mubr.f32.gmra.mrb[30].mxu0 %v738_v57 }
 0x32e   :  { %v1148_v62 = vpop.f32.mrb[16].mxu0 }
 0x32f   :  { %v815_v63 = vadd.f32 %v1148_v62, %v1637_v61  ;;  %v809_v0 = vpop.f32.mrb[17].mxu0 }
 0x330   :  { %v810_v4 = vadd.f32 %v1637_v61, %v809_v0 }
 0x331   :  { %1245 = vtanh.f32 %v815_v63 }
 0x332   :  { %1247 = vtanh.f32 %v810_v4  ;;  %v1151_v6 = vpop.f32.mrb[18].mxu0 }
 0x333   :  { %v825_v3 = vadd.f32 %v1151_v6, %v1637_v61  ;;  %v819_v1 = vpop.f32.mrb[19].mxu0 }
 0x334   :  { %v820_v14 = vadd.f32 %v1637_v61, %v819_v1 }
 0x335   :  { %1249 = vtanh.f32 %v825_v3 }
 0x336   :  { %1251 = vtanh.f32 %v820_v14  ;;  %v1154_v13 = vpop.f32.mrb[20].mxu0 }
 0x337   :  { %v835_v25 = vadd.f32 %v1154_v13, %v1637_v61  ;;  %v829_v7 = vpop.f32.mrb[21].mxu0 }
 0x338   :  { %v830_v22 = vadd.f32 %v1637_v61, %v829_v7 }
 0x339   :  { %1253 = vtanh.f32 %v835_v25 }
 0x33a   :  { %1255 = vtanh.f32 %v830_v22  ;;  %v1157_v39 = vpop.f32.mrb[22].mxu0 }
 0x33b   :  { %v1246_v38 = vpop.eup %1245  ;;  %v845_v5 = vadd.f32 %v1157_v39, %v1637_v61  ;;  %v839_v48 = vpop.f32.mrb[23].mxu0 }
 0x33c   :  { %v1248_v9 = vpop.eup %1247  ;;  %905 = vst [vmem:[%s1706_s3 + $0x8] sm:$0xff] %v1246_v38  ;;  %v840_v53 = vadd.f32 %v1637_v61, %v839_v48 }
 0x33d   :  { %904 = vst [vmem:[%s1706_s3] sm:$0xff] %v1248_v9  ;;  %1257 = vtanh.f32 %v845_v5 }
 0x33e   :  { %1259 = vtanh.f32 %v840_v53  ;;  %v1160_v56 = vpop.f32.mrb[24].mxu0 }
 0x33f   :  { %v1250_v10 = vpop.eup %1249  ;;  %v855_v11 = vadd.f32 %v1160_v56, %v1637_v61  ;;  %v849_v8 = vpop.f32.mrb[25].mxu0 }
 0x340   :  { %v1252_v12 = vpop.eup %1251  ;;  %907 = vst [vmem:[%s1706_s3 + $0x18] sm:$0xff] %v1250_v10  ;;  %v850_v15 = vadd.f32 %v1637_v61, %v849_v8 }
 0x341   :  { %906 = vst [vmem:[%s1706_s3 + $0x10] sm:$0xff] %v1252_v12  ;;  %1261 = vtanh.f32 %v855_v11 }
 0x342   :  { %1263 = vtanh.f32 %v850_v15  ;;  %v1163_v18 = vpop.f32.mrb[26].mxu0 }
 0x343   :  { %v1254_v43 = vpop.eup %1253  ;;  %v865_v19 = vadd.f32 %v1163_v18, %v1637_v61  ;;  %v859_v20 = vpop.f32.mrb[27].mxu0 }
 0x344   :  { %v1256_v21 = vpop.eup %1255  ;;  %909 = vst [vmem:[%s1706_s3 + $0x28] sm:$0xff] %v1254_v43  ;;  %v860_v23 = vadd.f32 %v1637_v61, %v859_v20 }
 0x345   :  { %908 = vst [vmem:[%s1706_s3 + $0x20] sm:$0xff] %v1256_v21  ;;  %1265 = vtanh.f32 %v865_v19 }
 0x346   :  { %1267 = vtanh.f32 %v860_v23  ;;  %v1166_v24 = vpop.f32.mrb[28].mxu0 }
 0x347   :  { %v1258_v27 = vpop.eup %1257  ;;  %v875_v28 = vadd.f32 %v1166_v24, %v1637_v61  ;;  %v869_v30 = vpop.f32.mrb[29].mxu0 }
 0x348   :  { %v1260_v31 = vpop.eup %1259  ;;  %911 = vst [vmem:[%s1706_s3 + $0x38] sm:$0xff] %v1258_v27  ;;  %v870_v32 = vadd.f32 %v1637_v61, %v869_v30 }
 0x349   :  { %910 = vst [vmem:[%s1706_s3 + $0x30] sm:$0xff] %v1260_v31  ;;  %1269 = vtanh.f32 %v875_v28 }
 0x34a   :  { %1271 = vtanh.f32 %v870_v32  ;;  %v1169_v33 = vpop.f32.mrb[30].mxu0 }
 0x34b   :  { %v1262_v34 = vpop.eup %1261  ;;  %v885_v35 = vadd.f32 %v1169_v33, %v1637_v61  ;;  %v879_v36 = vpop.f32.mrb[31].mxu0 }
 0x34c   :  { %v1264_v37 = vpop.eup %1263  ;;  %913 = vst [vmem:[%s1706_s3 + $0x48] sm:$0xff] %v1262_v34  ;;  %v880_v42 = vadd.f32 %v1637_v61, %v879_v36 }
 0x34d   :  { %912 = vst [vmem:[%s1706_s3 + $0x40] sm:$0xff] %v1264_v37  ;;  %1273 = vtanh.f32 %v885_v35 }
 0x34e   :  { %1275 = vtanh.f32 %v880_v42 }
 0x34f   :  { %v1266_v60 = vpop.eup %1265 }
 0x350   :  { %v1268_v44 = vpop.eup %1267  ;;  %915 = vst [vmem:[%s1706_s3 + $0x58] sm:$0xff] %v1266_v60 }
 0x351   :  { %914 = vst [vmem:[%s1706_s3 + $0x50] sm:$0xff] %v1268_v44 }
 0x353   :  { %v1270_v45 = vpop.eup %1269 }
 0x354   :  { %v1272_v46 = vpop.eup %1271  ;;  %917 = vst [vmem:[%s1706_s3 + $0x68] sm:$0xff] %v1270_v45 }
 0x355   :  { %916 = vst [vmem:[%s1706_s3 + $0x60] sm:$0xff] %v1272_v46 }
 0x357   :  { %v1274_v47 = vpop.eup %1273 }
 0x358   :  { %v1276_v50 = vpop.eup %1275  ;;  %919 = vst [vmem:[%s1706_s3 + $0x78] sm:$0xff] %v1274_v47 }
 0x359   :  { %918 = vst [vmem:[%s1706_s3 + $0x70] sm:$0xff] %v1276_v50 }
 0x35a   :  { %924 = vsyncpa [#allocation3], 1 }

</bundles_post_ra>
